<compile_context>
chip_gen: v7x
topology: tpu7x:2x2x1
jax: 0.10.0
libtpu: 0.0.40
codegen_flags: <defaults>
</compile_context>

<pallas_src>
import jax
import jax.numpy as jnp
import numpy as np
from jax import lax
from jax.experimental import pallas as pl
from jax.experimental.pallas import tpu as pltpu

_LANES = 128                    # vreg lane width
_SUBLANES = 8                   # f32 vreg sublane depth
_CHUNK = _SUBLANES * _LANES     # 1024 batch elements per dense vreg chunk
_TARGET_TILE_ROWS = 256         # 256 * 128 = 32K batch elements per grid step


def _atan2(y, x):
    """atan2(y, x) with VPU/EUP ops only (mul/add/select + approx reciprocal).

    Octant reduction to |u| <= tan(pi/8), Cephes atanf polynomial
    (poly err ~2.4e-7; the approx reciprocals add ~1e-4), quadrant fixups.
    atan2(0, 0) -> 0, so zero padding of the batch is NaN-safe.
    """
    ax = jnp.abs(x)
    ay = jnp.abs(y)
    mx = jnp.maximum(ax, ay)
    mn = jnp.minimum(ax, ay)
    t = mn * pl.reciprocal(jnp.maximum(mx, 1e-30), approx=True)    # in [0, 1]
    hi = t > 0.4142135623730951                                    # tan(pi/8)
    u = jnp.where(hi, (t - 1.0) * pl.reciprocal(t + 1.0, approx=True), t)
    z = u * u
    p = (((8.05374449538e-2 * z - 1.38776856032e-1) * z
          + 1.99777106478e-1) * z - 3.33329491539e-1) * z * u + u
    phi = jnp.where(hi, p + 0.7853981633974483, p)             # + pi/4
    phi = jnp.where(ay > ax, 1.5707963267948966 - phi, phi)    # octant swap
    phi = jnp.where(x < 0.0, jnp.pi - phi, phi)                # left half-plane
    phi = jnp.where(y < 0.0, -phi, phi)                        # lower half-plane
    return phi


def polarnet_kernel(x_ref, y_ref, w1x_ref, w1y_ref, b1_ref, w2_ref, b2_ref,
                    out_ref):
    """One batch tile of TR rows x 128 lanes (TR multiple of 8).

    x_ref, y_ref : (TR, 128)   batch coordinates, sublane+lane dense
    w1x_ref      : (H, 8, 128) fc_1.weight[:, 0], pre-broadcast (VMEM resident)
    w1y_ref      : (H, 8, 128) fc_1.weight[:, 1], pre-broadcast
    b1_ref       : (H, 8, 128) fc_1.bias,         pre-broadcast
    w2_ref       : (H, 8, 128) fc_2.weight[0, :], pre-broadcast
    b2_ref       : (1, 1)      fc_2.bias (SMEM scalar)
    out_ref      : (TR, 128)   sigmoid output
    """
    H = w1x_ref.shape[0]
    TR = out_ref.shape[0]
    n_chunks = TR // _SUBLANES
    b2 = b2_ref[0, 0]

    def chunk_body(c, carry):
        r0 = pl.multiple_of(c * _SUBLANES, _SUBLANES)
        rows = pl.ds(r0, _SUBLANES)
        x = x_ref[rows, :]                        # (8, 128) dense vreg
        y = y_ref[rows, :]
        r = jnp.sqrt(x * x + y * y)               # polar radius
        a = _atan2(y, x)                          # polar angle
        rb = r[None, :, :]                        # (1, 8, 128)
        ab = a[None, :, :]

        # fc_1 + tanh + fc_2 reduction, blocked by 8 hidden units so the live
        # set stays inside the vreg file.  Weights are already (H, 8, 128) in
        # VMEM -> plain loads on the spare vld slots, zero broadcast work here.
        acc = jnp.zeros((_SUBLANES, _LANES), jnp.float32)
        for hb in range(0, H, 8):
            he = hb + min(8, H - hb)
            h1 = (w1x_ref[hb:he, :, :] * rb
                  + w1y_ref[hb:he, :, :] * ab
                  + b1_ref[hb:he, :, :])
            acc = acc + jnp.sum(jnp.tanh(h1) * w2_ref[hb:he, :, :], axis=0)

        # sigmoid(z) = 0.5 * (tanh(z / 2) + 1): a single EUP transcendental.
        out_ref[rows, :] = 0.5 * (jnp.tanh(0.5 * (acc + b2)) + 1.0)
        return carry

    lax.fori_loop(0, n_chunks, chunk_body, 0)


@jax.jit
def polarnet_forward(inp, w1, b1, w2, b2):
    """inp: (N, 2) f32; torch-layout params w1:(H,2), b1:(H,), w2:(1,H), b2:(1,).
    Returns the sigmoid output of shape (N, 1)."""
    N = inp.shape[0]
    H = w1.shape[0]
    f32 = jnp.float32

    # --- batch layout: element n -> (row n // 128, lane n % 128), rows % 8 == 0
    R = (-(-N // _CHUNK)) * _SUBLANES                 # rows, multiple of 8
    if R <= _SUBLANES:
        TR = R                                        # one chunk -> single step
    else:
        half = -(-R // 2)                             # keep >= 2 steps (v7x TCs)
        TR = min(_TARGET_TILE_ROWS, (-(-half // _SUBLANES)) * _SUBLANES)
    R_pad = (-(-R // TR)) * TR
    n_pad = R_pad * _LANES

    x_col = jnp.pad(inp[:, 0].astype(f32), [(0, n_pad - N)]).reshape(R_pad, _LANES)
    y_col = jnp.pad(inp[:, 1].astype(f32), [(0, n_pad - N)]).reshape(R_pad, _LANES)

    # --- tiny params, pre-broadcast to full (8,128) vregs (VMEM resident)
    def bcast(v):
        return jnp.broadcast_to(v.astype(f32).reshape(H, 1, 1),
                                (H, _SUBLANES, _LANES))
    w1x_b = bcast(w1[:, 0])
    w1y_b = bcast(w1[:, 1])
    b1_b = bcast(b1)
    w2_b = bcast(w2.reshape(H))
    b2_s = b2.reshape(1, 1).astype(f32)

    const3 = lambda i: (0, 0, 0)
    out = pl.pallas_call(
        polarnet_kernel,
        out_shape=jax.ShapeDtypeStruct((R_pad, _LANES), f32),
        grid=(R_pad // TR,),
        in_specs=[
            pl.BlockSpec((TR, _LANES), lambda i: (i, 0)),            # x tile
            pl.BlockSpec((TR, _LANES), lambda i: (i, 0)),            # y tile
            pl.BlockSpec((H, _SUBLANES, _LANES), const3),            # w1[:,0]
            pl.BlockSpec((H, _SUBLANES, _LANES), const3),            # w1[:,1]
            pl.BlockSpec((H, _SUBLANES, _LANES), const3),            # b1
            pl.BlockSpec((H, _SUBLANES, _LANES), const3),            # w2
            pl.BlockSpec(memory_space=pltpu.MemorySpace.SMEM),       # b2 scalar
        ],
        out_specs=pl.BlockSpec((TR, _LANES), lambda i: (i, 0)),
        compiler_params=pltpu.CompilerParams(
            dimension_semantics=("parallel",)),
    )(x_col, y_col, w1x_b, w1y_b, b1_b, w2_b, b2_s)

    return out.reshape(-1)[:N].reshape(N, 1)


def polarnet_reference(inp, w1, b1, w2, b2):
    """Pure-JAX reference matching the PyTorch forward exactly (torch layouts)."""
    x = inp[:, 0]
    y = inp[:, 1]
    r = jnp.sqrt(x ** 2 + y ** 2).reshape(-1, 1)
    a = jnp.arctan2(y, x).reshape(-1, 1)
    temp = jnp.concatenate([r, a], axis=1)
    h1 = jnp.tanh(temp @ w1.T + b1)
    h2 = h1 @ w2.T + b2
    return jax.nn.sigmoid(h2)


def init_params(key, num_hid):
    """nn.Linear-style U(-1/sqrt(fan_in), 1/sqrt(fan_in)) init, torch layouts."""
    k1, k2, k3, k4 = jax.random.split(key, 4)
    lim1 = 1.0 / np.sqrt(2.0)
    lim2 = 1.0 / np.sqrt(float(num_hid))
    w1 = jax.random.uniform(k1, (num_hid, 2), jnp.float32, -lim1, lim1)
    b1 = jax.random.uniform(k2, (num_hid,), jnp.float32, -lim1, lim1)
    w2 = jax.random.uniform(k3, (1, num_hid), jnp.float32, -lim2, lim2)
    b2 = jax.random.uniform(k4, (1,), jnp.float32, -lim2, lim2)
    return w1, b1, w2, b2


if __name__ == "__main__":
    key = jax.random.PRNGKey(0)
    k_in, k_par = jax.random.split(key)

    N = 8          # batch
    NUM_HID = 32   # hidden units

    inp = jax.random.normal(k_in, (N, 2), dtype=jnp.float32)
    w1, b1, w2, b2 = init_params(k_par, NUM_HID)

    # Tolerance relaxed vs. 1e-5: the approx reciprocals inside the in-kernel
    # atan2 cost a few e-4 of angle accuracy (propagates to <~1e-3 at the output).
    TOL = 2e-3

    out = jax.block_until_ready(polarnet_forward(inp, w1, b1, w2, b2))
    ref = jax.block_until_ready(polarnet_reference(inp, w1, b1, w2, b2))
    assert out.shape == (N, 1)
    assert np.allclose(np.asarray(out), np.asarray(ref), atol=TOL, rtol=0.0)

    # Multi-step "parallel" grid (2 tiles) + zero-padded ragged tail.
    N2 = 2000
    inp2 = jax.random.normal(jax.random.PRNGKey(1), (N2, 2), dtype=jnp.float32)
    out2 = jax.block_until_ready(polarnet_forward(inp2, w1, b1, w2, b2))
    ref2 = jax.block_until_ready(polarnet_reference(inp2, w1, b1, w2, b2))
    assert out2.shape == (N2, 1)
    assert np.allclose(np.asarray(out2), np.asarray(ref2), atol=TOL, rtol=0.0)

    # Larger batch: exercises the inner (8,128)-chunk fori_loop (20 chunks/tile).
    N3 = 40000
    inp3 = jax.random.normal(jax.random.PRNGKey(2), (N3, 2), dtype=jnp.float32)
    out3 = jax.block_until_ready(polarnet_forward(inp3, w1, b1, w2, b2))
    ref3 = jax.block_until_ready(polarnet_reference(inp3, w1, b1, w2, b2))
    assert out3.shape == (N3, 1)
    assert np.allclose(np.asarray(out3), np.asarray(ref3), atol=TOL, rtol=0.0)

    print("KERNEL_OK")
</pallas_src>

<mosaic_0001>
module attributes {stable_mosaic.version = 11 : i64} {
  func.func @polarnet_kernel(%arg0: i32, %arg1: memref<8x128xf32, #tpu.memory_space<vmem>>, %arg2: memref<8x128xf32, #tpu.memory_space<vmem>>, %arg3: memref<32x8x128xf32, #tpu.memory_space<vmem>>, %arg4: memref<32x8x128xf32, #tpu.memory_space<vmem>>, %arg5: memref<32x8x128xf32, #tpu.memory_space<vmem>>, %arg6: memref<32x8x128xf32, #tpu.memory_space<vmem>>, %arg7: memref<1x1xf32, #tpu.memory_space<smem>>, %arg8: memref<8x128xf32, #tpu.memory_space<vmem>>) attributes {dimension_semantics = [#tpu.dimension_semantics<parallel>], iteration_bounds = array<i64: 1>, scalar_prefetch = 0 : i64, scratch_operands = 0 : i64, tpu.core_type = #tpu.core_type<tc>, window_params = [{transform_indices = @transform_0, window_bounds = array<i64: 8, 128>}, {transform_indices = @transform_1, window_bounds = array<i64: 8, 128>}, {pipeline_mode = #tpu.pipeline_mode<synchronous>, transform_indices = @transform_2, window_bounds = array<i64: 32, 8, 128>}, {pipeline_mode = #tpu.pipeline_mode<synchronous>, transform_indices = @transform_3, window_bounds = array<i64: 32, 8, 128>}, {pipeline_mode = #tpu.pipeline_mode<synchronous>, transform_indices = @transform_4, window_bounds = array<i64: 32, 8, 128>}, {pipeline_mode = #tpu.pipeline_mode<synchronous>, transform_indices = @transform_5, window_bounds = array<i64: 32, 8, 128>}, {transform_indices = @transform_6, window_bounds = array<i64: 1, 1>}, {transform_indices = @transform_7, window_bounds = array<i64: 8, 128>}]} {
    %c0 = arith.constant 0 : index
    %c0_0 = arith.constant 0 : index
    %0 = memref.load %arg7[%c0, %c0_0] : memref<1x1xf32, #tpu.memory_space<smem>>
    %c0_i32 = arith.constant 0 : i32
    %c8_i32 = arith.constant 8 : i32
    %1 = arith.muli %c0_i32, %c8_i32 : i32
    %2 = tpu.assume_multiple %1, 8 : i32
    %3 = arith.index_cast %2 : i32 to index
    %c0_1 = arith.constant 0 : index
    %4 = vector.load %arg1[%3, %c0_1] : memref<8x128xf32, #tpu.memory_space<vmem>>, vector<8x128xf32>
    %5 = arith.index_cast %2 : i32 to index
    %c0_2 = arith.constant 0 : index
    %6 = vector.load %arg2[%5, %c0_2] : memref<8x128xf32, #tpu.memory_space<vmem>>, vector<8x128xf32>
    %7 = arith.mulf %4, %4 : vector<8x128xf32>
    %8 = arith.mulf %6, %6 : vector<8x128xf32>
    %9 = arith.addf %7, %8 : vector<8x128xf32>
    %10 = math.sqrt %9 : vector<8x128xf32>
    %11 = math.absf %4 : vector<8x128xf32>
    %12 = math.absf %6 : vector<8x128xf32>
    %13 = arith.maximumf %11, %12 : vector<8x128xf32>
    %14 = arith.minimumf %11, %12 : vector<8x128xf32>
    %cst = arith.constant 1.000000e-30 : f32
    %15 = vector.broadcast %cst : f32 to vector<8x128xf32>
    %16 = arith.maximumf %13, %15 : vector<8x128xf32>
    %17 = tpu.reciprocal %16 {approx = true} : vector<8x128xf32> -> vector<8x128xf32>
    %18 = arith.mulf %14, %17 : vector<8x128xf32>
    %cst_3 = arith.constant 0.414213568 : f32
    %19 = vector.broadcast %cst_3 : f32 to vector<8x128xf32>
    %20 = arith.cmpf ogt, %18, %19 : vector<8x128xf32>
    %cst_4 = arith.constant 1.000000e+00 : f32
    %21 = vector.broadcast %cst_4 : f32 to vector<8x128xf32>
    %22 = arith.subf %18, %21 : vector<8x128xf32>
    %cst_5 = arith.constant 1.000000e+00 : f32
    %23 = vector.broadcast %cst_5 : f32 to vector<8x128xf32>
    %24 = arith.addf %18, %23 : vector<8x128xf32>
    %25 = tpu.reciprocal %24 {approx = true} : vector<8x128xf32> -> vector<8x128xf32>
    %26 = arith.mulf %22, %25 : vector<8x128xf32>
    %27 = arith.select %20, %26, %18 : vector<8x128xi1>, vector<8x128xf32>
    %28 = arith.mulf %27, %27 : vector<8x128xf32>
    %cst_6 = arith.constant 0.0805374458 : f32
    %29 = vector.broadcast %cst_6 : f32 to vector<8x128xf32>
    %30 = arith.mulf %29, %28 : vector<8x128xf32>
    %cst_7 = arith.constant 0.138776854 : f32
    %31 = vector.broadcast %cst_7 : f32 to vector<8x128xf32>
    %32 = arith.subf %30, %31 : vector<8x128xf32>
    %33 = arith.mulf %32, %28 : vector<8x128xf32>
    %cst_8 = arith.constant 0.199777111 : f32
    %34 = vector.broadcast %cst_8 : f32 to vector<8x128xf32>
    %35 = arith.addf %33, %34 : vector<8x128xf32>
    %36 = arith.mulf %35, %28 : vector<8x128xf32>
    %cst_9 = arith.constant 0.333329499 : f32
    %37 = vector.broadcast %cst_9 : f32 to vector<8x128xf32>
    %38 = arith.subf %36, %37 : vector<8x128xf32>
    %39 = arith.mulf %38, %28 : vector<8x128xf32>
    %40 = arith.mulf %39, %27 : vector<8x128xf32>
    %41 = arith.addf %40, %27 : vector<8x128xf32>
    %cst_10 = arith.constant 0.785398185 : f32
    %42 = vector.broadcast %cst_10 : f32 to vector<8x128xf32>
    %43 = arith.addf %41, %42 : vector<8x128xf32>
    %44 = arith.select %20, %43, %41 : vector<8x128xi1>, vector<8x128xf32>
    %45 = arith.cmpf ogt, %12, %11 : vector<8x128xf32>
    %cst_11 = arith.constant 1.57079637 : f32
    %46 = vector.broadcast %cst_11 : f32 to vector<8x128xf32>
    %47 = arith.subf %46, %44 : vector<8x128xf32>
    %48 = arith.select %45, %47, %44 : vector<8x128xi1>, vector<8x128xf32>
    %cst_12 = arith.constant 0.000000e+00 : f32
    %49 = vector.broadcast %cst_12 : f32 to vector<8x128xf32>
    %50 = arith.cmpf olt, %4, %49 : vector<8x128xf32>
    %cst_13 = arith.constant 3.14159274 : f32
    %51 = vector.broadcast %cst_13 : f32 to vector<8x128xf32>
    %52 = arith.subf %51, %48 : vector<8x128xf32>
    %53 = arith.select %50, %52, %48 : vector<8x128xi1>, vector<8x128xf32>
    %cst_14 = arith.constant 0.000000e+00 : f32
    %54 = vector.broadcast %cst_14 : f32 to vector<8x128xf32>
    %55 = arith.cmpf olt, %6, %54 : vector<8x128xf32>
    %cst_15 = arith.constant 0.000000e+00 : f32
    %56 = vector.broadcast %cst_15 : f32 to vector<8x128xf32>
    %57 = arith.subf %56, %53 : vector<8x128xf32>
    %58 = arith.select %55, %57, %53 : vector<8x128xi1>, vector<8x128xf32>
    %59 = vector.shape_cast %10 : vector<8x128xf32> to vector<1x8x128xf32>
    %60 = vector.shape_cast %58 : vector<8x128xf32> to vector<1x8x128xf32>
    %cst_16 = arith.constant 0.000000e+00 : f32
    %61 = vector.broadcast %cst_16 : f32 to vector<8x128xf32>
    %c0_17 = arith.constant 0 : index
    %c0_18 = arith.constant 0 : index
    %c0_19 = arith.constant 0 : index
    %62 = vector.load %arg3[%c0_17, %c0_18, %c0_19] : memref<32x8x128xf32, #tpu.memory_space<vmem>>, vector<8x8x128xf32>
    %63 = vector.broadcast %59 : vector<1x8x128xf32> to vector<8x8x128xf32>
    %64 = arith.mulf %62, %63 : vector<8x8x128xf32>
    %c0_20 = arith.constant 0 : index
    %c0_21 = arith.constant 0 : index
    %c0_22 = arith.constant 0 : index
    %65 = vector.load %arg4[%c0_20, %c0_21, %c0_22] : memref<32x8x128xf32, #tpu.memory_space<vmem>>, vector<8x8x128xf32>
    %66 = vector.broadcast %60 : vector<1x8x128xf32> to vector<8x8x128xf32>
    %67 = arith.mulf %65, %66 : vector<8x8x128xf32>
    %68 = arith.addf %64, %67 : vector<8x8x128xf32>
    %c0_23 = arith.constant 0 : index
    %c0_24 = arith.constant 0 : index
    %c0_25 = arith.constant 0 : index
    %69 = vector.load %arg5[%c0_23, %c0_24, %c0_25] : memref<32x8x128xf32, #tpu.memory_space<vmem>>, vector<8x8x128xf32>
    %70 = arith.addf %68, %69 : vector<8x8x128xf32>
    %71 = math.tanh %70 : vector<8x8x128xf32>
    %c0_26 = arith.constant 0 : index
    %c0_27 = arith.constant 0 : index
    %c0_28 = arith.constant 0 : index
    %72 = vector.load %arg6[%c0_26, %c0_27, %c0_28] : memref<32x8x128xf32, #tpu.memory_space<vmem>>, vector<8x8x128xf32>
    %73 = arith.mulf %71, %72 : vector<8x8x128xf32>
    %cst_29 = arith.constant dense<0.000000e+00> : vector<8x128xf32>
    %74 = vector.multi_reduction <add>, %73, %cst_29 [0] : vector<8x8x128xf32> to vector<8x128xf32>
    %75 = arith.addf %61, %74 : vector<8x128xf32>
    %c8 = arith.constant 8 : index
    %c0_30 = arith.constant 0 : index
    %c0_31 = arith.constant 0 : index
    %76 = vector.load %arg3[%c8, %c0_30, %c0_31] : memref<32x8x128xf32, #tpu.memory_space<vmem>>, vector<8x8x128xf32>
    %77 = vector.broadcast %59 : vector<1x8x128xf32> to vector<8x8x128xf32>
    %78 = arith.mulf %76, %77 : vector<8x8x128xf32>
    %c8_32 = arith.constant 8 : index
    %c0_33 = arith.constant 0 : index
    %c0_34 = arith.constant 0 : index
    %79 = vector.load %arg4[%c8_32, %c0_33, %c0_34] : memref<32x8x128xf32, #tpu.memory_space<vmem>>, vector<8x8x128xf32>
    %80 = vector.broadcast %60 : vector<1x8x128xf32> to vector<8x8x128xf32>
    %81 = arith.mulf %79, %80 : vector<8x8x128xf32>
    %82 = arith.addf %78, %81 : vector<8x8x128xf32>
    %c8_35 = arith.constant 8 : index
    %c0_36 = arith.constant 0 : index
    %c0_37 = arith.constant 0 : index
    %83 = vector.load %arg5[%c8_35, %c0_36, %c0_37] : memref<32x8x128xf32, #tpu.memory_space<vmem>>, vector<8x8x128xf32>
    %84 = arith.addf %82, %83 : vector<8x8x128xf32>
    %85 = math.tanh %84 : vector<8x8x128xf32>
    %c8_38 = arith.constant 8 : index
    %c0_39 = arith.constant 0 : index
    %c0_40 = arith.constant 0 : index
    %86 = vector.load %arg6[%c8_38, %c0_39, %c0_40] : memref<32x8x128xf32, #tpu.memory_space<vmem>>, vector<8x8x128xf32>
    %87 = arith.mulf %85, %86 : vector<8x8x128xf32>
    %cst_41 = arith.constant dense<0.000000e+00> : vector<8x128xf32>
    %88 = vector.multi_reduction <add>, %87, %cst_41 [0] : vector<8x8x128xf32> to vector<8x128xf32>
    %89 = arith.addf %75, %88 : vector<8x128xf32>
    %c16 = arith.constant 16 : index
    %c0_42 = arith.constant 0 : index
    %c0_43 = arith.constant 0 : index
    %90 = vector.load %arg3[%c16, %c0_42, %c0_43] : memref<32x8x128xf32, #tpu.memory_space<vmem>>, vector<8x8x128xf32>
    %91 = vector.broadcast %59 : vector<1x8x128xf32> to vector<8x8x128xf32>
    %92 = arith.mulf %90, %91 : vector<8x8x128xf32>
    %c16_44 = arith.constant 16 : index
    %c0_45 = arith.constant 0 : index
    %c0_46 = arith.constant 0 : index
    %93 = vector.load %arg4[%c16_44, %c0_45, %c0_46] : memref<32x8x128xf32, #tpu.memory_space<vmem>>, vector<8x8x128xf32>
    %94 = vector.broadcast %60 : vector<1x8x128xf32> to vector<8x8x128xf32>
    %95 = arith.mulf %93, %94 : vector<8x8x128xf32>
    %96 = arith.addf %92, %95 : vector<8x8x128xf32>
    %c16_47 = arith.constant 16 : index
    %c0_48 = arith.constant 0 : index
    %c0_49 = arith.constant 0 : index
    %97 = vector.load %arg5[%c16_47, %c0_48, %c0_49] : memref<32x8x128xf32, #tpu.memory_space<vmem>>, vector<8x8x128xf32>
    %98 = arith.addf %96, %97 : vector<8x8x128xf32>
    %99 = math.tanh %98 : vector<8x8x128xf32>
    %c16_50 = arith.constant 16 : index
    %c0_51 = arith.constant 0 : index
    %c0_52 = arith.constant 0 : index
    %100 = vector.load %arg6[%c16_50, %c0_51, %c0_52] : memref<32x8x128xf32, #tpu.memory_space<vmem>>, vector<8x8x128xf32>
    %101 = arith.mulf %99, %100 : vector<8x8x128xf32>
    %cst_53 = arith.constant dense<0.000000e+00> : vector<8x128xf32>
    %102 = vector.multi_reduction <add>, %101, %cst_53 [0] : vector<8x8x128xf32> to vector<8x128xf32>
    %103 = arith.addf %89, %102 : vector<8x128xf32>
    %c24 = arith.constant 24 : index
    %c0_54 = arith.constant 0 : index
    %c0_55 = arith.constant 0 : index
    %104 = vector.load %arg3[%c24, %c0_54, %c0_55] : memref<32x8x128xf32, #tpu.memory_space<vmem>>, vector<8x8x128xf32>
    %105 = vector.broadcast %59 : vector<1x8x128xf32> to vector<8x8x128xf32>
    %106 = arith.mulf %104, %105 : vector<8x8x128xf32>
    %c24_56 = arith.constant 24 : index
    %c0_57 = arith.constant 0 : index
    %c0_58 = arith.constant 0 : index
    %107 = vector.load %arg4[%c24_56, %c0_57, %c0_58] : memref<32x8x128xf32, #tpu.memory_space<vmem>>, vector<8x8x128xf32>
    %108 = vector.broadcast %60 : vector<1x8x128xf32> to vector<8x8x128xf32>
    %109 = arith.mulf %107, %108 : vector<8x8x128xf32>
    %110 = arith.addf %106, %109 : vector<8x8x128xf32>
    %c24_59 = arith.constant 24 : index
    %c0_60 = arith.constant 0 : index
    %c0_61 = arith.constant 0 : index
    %111 = vector.load %arg5[%c24_59, %c0_60, %c0_61] : memref<32x8x128xf32, #tpu.memory_space<vmem>>, vector<8x8x128xf32>
    %112 = arith.addf %110, %111 : vector<8x8x128xf32>
    %113 = math.tanh %112 : vector<8x8x128xf32>
    %c24_62 = arith.constant 24 : index
    %c0_63 = arith.constant 0 : index
    %c0_64 = arith.constant 0 : index
    %114 = vector.load %arg6[%c24_62, %c0_63, %c0_64] : memref<32x8x128xf32, #tpu.memory_space<vmem>>, vector<8x8x128xf32>
    %115 = arith.mulf %113, %114 : vector<8x8x128xf32>
    %cst_65 = arith.constant dense<0.000000e+00> : vector<8x128xf32>
    %116 = vector.multi_reduction <add>, %115, %cst_65 [0] : vector<8x8x128xf32> to vector<8x128xf32>
    %117 = arith.addf %103, %116 : vector<8x128xf32>
    %118 = vector.broadcast %0 : f32 to vector<8x128xf32>
    %119 = arith.addf %117, %118 : vector<8x128xf32>
    %cst_66 = arith.constant 5.000000e-01 : f32
    %120 = vector.broadcast %cst_66 : f32 to vector<8x128xf32>
    %121 = arith.mulf %120, %119 : vector<8x128xf32>
    %122 = math.tanh %121 : vector<8x128xf32>
    %cst_67 = arith.constant 1.000000e+00 : f32
    %123 = vector.broadcast %cst_67 : f32 to vector<8x128xf32>
    %124 = arith.addf %122, %123 : vector<8x128xf32>
    %cst_68 = arith.constant 5.000000e-01 : f32
    %125 = vector.broadcast %cst_68 : f32 to vector<8x128xf32>
    %126 = arith.mulf %125, %124 : vector<8x128xf32>
    %127 = arith.index_cast %2 : i32 to index
    %c0_69 = arith.constant 0 : index
    %128 = vector.load %arg8[%127, %c0_69] : memref<8x128xf32, #tpu.memory_space<vmem>>, vector<8x128xf32>
    tpu.vector_store %arg8[%127, %c0_69], %126 {strides = array<i32>} : memref<8x128xf32, #tpu.memory_space<vmem>>, vector<8x128xf32>,
    %c1_i32 = arith.constant 1 : i32
    return
  }
  func.func @transform_0(%arg0: i32) -> (i32, i32) {
    %c0_i32 = arith.constant 0 : i32
    %c0_i32_0 = arith.constant 0 : i32
    return %arg0, %c0_i32 : i32, i32
  }
  func.func @transform_1(%arg0: i32) -> (i32, i32) {
    %c0_i32 = arith.constant 0 : i32
    %c0_i32_0 = arith.constant 0 : i32
    return %arg0, %c0_i32 : i32, i32
  }
  func.func @transform_2(%arg0: i32) -> (i32, i32, i32) {
    %c0_i32 = arith.constant 0 : i32
    %c0_i32_0 = arith.constant 0 : i32
    %c0_i32_1 = arith.constant 0 : i32
    %c0_i32_2 = arith.constant 0 : i32
    return %c0_i32, %c0_i32_0, %c0_i32_1 : i32, i32, i32
  }
  func.func @transform_3(%arg0: i32) -> (i32, i32, i32) {
    %c0_i32 = arith.constant 0 : i32
    %c0_i32_0 = arith.constant 0 : i32
    %c0_i32_1 = arith.constant 0 : i32
    %c0_i32_2 = arith.constant 0 : i32
    return %c0_i32, %c0_i32_0, %c0_i32_1 : i32, i32, i32
  }
  func.func @transform_4(%arg0: i32) -> (i32, i32, i32) {
    %c0_i32 = arith.constant 0 : i32
    %c0_i32_0 = arith.constant 0 : i32
    %c0_i32_1 = arith.constant 0 : i32
    %c0_i32_2 = arith.constant 0 : i32
    return %c0_i32, %c0_i32_0, %c0_i32_1 : i32, i32, i32
  }
  func.func @transform_5(%arg0: i32) -> (i32, i32, i32) {
    %c0_i32 = arith.constant 0 : i32
    %c0_i32_0 = arith.constant 0 : i32
    %c0_i32_1 = arith.constant 0 : i32
    %c0_i32_2 = arith.constant 0 : i32
    return %c0_i32, %c0_i32_0, %c0_i32_1 : i32, i32, i32
  }
  func.func @transform_6(%arg0: i32) -> (i32, i32) {
    %c0_i32 = arith.constant 0 : i32
    %c0_i32_0 = arith.constant 0 : i32
    %c0_i32_1 = arith.constant 0 : i32
    return %c0_i32, %c0_i32_0 : i32, i32
  }
  func.func @transform_7(%arg0: i32) -> (i32, i32) {
    %c0_i32 = arith.constant 0 : i32
    %c0_i32_0 = arith.constant 0 : i32
    return %arg0, %c0_i32 : i32, i32
  }
}

</mosaic_0001>

<bundles_post_ra>
// kernel: polarnet_forward.1
= control target key start
LH: loop header
LB: loop body
LE: loop exit
PB: predicated region body
PF: predicated region fallthrough
CT: control target
= control target key end

     0   :  { %s1232_s0 = inlined_call_operand.vmem [shape: f32[8,128], index: 0, kind: input, shape index: {}]   ;;  %s1233_s1 = inlined_call_operand.vmem [shape: f32[8,128], index: 1, kind: input, shape index: {}]   ;;  %s1234_s2 = inlined_call_operand.vmem [shape: f32[32,8,128], index: 2, kind: input, shape index: {}]   ;;  %s1235_s3 = inlined_call_operand.vmem [shape: f32[32,8,128], index: 3, kind: input, shape index: {}]   ;;  %s1236_s4 = inlined_call_operand.vmem [shape: f32[32,8,128], index: 4, kind: input, shape index: {}]   ;;  %s1237_s5 = inlined_call_operand.vmem [shape: f32[32,8,128], index: 5, kind: input, shape index: {}]   ;;  %s1238_s6 = inlined_call_operand.<no memory space> [shape: f32[1,1], index: 6, kind: input, shape index: {}]   ;;  %s1239_s7 = inlined_call_operand.vmem [shape: f32[8,128], index: 7, kind: output, shape index: {}]  }
   0x1   :  { %v663_v0 = vld [vmem:[%s1232_s0] sm:$0xff]  ;;  %v75_v35 = vld [vmem:[%s1234_s2 + $0x8] sm:$0xff]  ;;  %v76_v37 = vld [vmem:[%s1234_s2 + $0x10] sm:$0xff] }
   0x2   :  { %v668_v1 = vld [vmem:[%s1233_s1] sm:$0xff]  ;;  %v40_v2 = vand.u32 2147483647, %v663_v0  ;;  %v30_v12 = vmul.f32 %v663_v0, %v663_v0  ;;  %v77_v38 = vld [vmem:[%s1234_s2 + $0x18] sm:$0xff]  ;;  %vm68_vm4 = vcmp.lt.f32.partialorder %v663_v0, 0.0  ;;  %v79_v41 = vld [vmem:[%s1234_s2 + $0x28] sm:$0xff] }
   0x3   :  { %v41_v3 = vand.u32 2147483647, %v668_v1  ;;  %v31_v13 = vmul.f32 %v668_v1, %v668_v1  ;;  %v74_v34 = vld [vmem:[%s1234_s2] sm:$0xff]  ;;  %v80_v42 = vld [vmem:[%s1234_s2 + $0x30] sm:$0xff]  ;;  %v81_v43 = vld [vmem:[%s1234_s2 + $0x38] sm:$0xff]  ;;  %vm71_vm5 = vcmp.lt.f32.partialorder %v668_v1, 0.0 }
   0x4   :  { %v78_v39 = vld [vmem:[%s1234_s2 + $0x20] sm:$0xff]  ;;  %v453_v46 = vld [vmem:[%s1234_s2 + $0x48] sm:$0xff]  ;;  %v454_v47 = vld [vmem:[%s1234_s2 + $0x50] sm:$0xff] }
   0x5   :  { %v42_v4 = vmax.f32 %v40_v2, %v41_v3  ;;  %v43_v6 = vmin.f32 %v40_v2, %v41_v3  ;;  %v32_v16 = vadd.f32 %v31_v13, %v30_v12  ;;  %vm65_vm3 = vcmp.gt.f32.partialorder %v41_v3, %v40_v2  ;;  %v452_v45 = vld [vmem:[%s1234_s2 + $0x40] sm:$0xff]  ;;  %v91_v53 = vld [vmem:[%s1235_s3 + $0x8] sm:$0xff]  ;;  %v455_v54 = vld [vmem:[%s1234_s2 + $0x58] sm:$0xff] }
   0x6   :  { %v90_v52 = vld [vmem:[%s1235_s3] sm:$0xff]  ;;  %v457_v56 = vld [vmem:[%s1234_s2 + $0x68] sm:$0xff]  ;;  %v458_v61 = vld [vmem:[%s1234_s2 + $0x70] sm:$0xff] }
   0x7   :  { %v44_v5 = vmax.f32 %v42_v4, 1e-30  ;;  %vm35_vm1 = vcmp.eq.f32.partialorder %v32_v16, inf  ;;  %v38_v29 = vand.u32 2147483648, %v32_v16  ;;  %vm37_vm2 = vcmp.eq.f32.partialorder %v32_v16, 0.0  ;;  %v456_v55 = vld [vmem:[%s1234_s2 + $0x60] sm:$0xff] }
   0x8   :  { %v459_v62 = vld [vmem:[%s1234_s2 + $0x78] sm:$0xff]  ;;  %v484_v63 = vld [vmem:[%s1234_s2 + $0x80] sm:$0xff]  ;;  %v92_v3 = vld [vmem:[%s1235_s3 + $0x10] sm:$0xff] }
   0x9   :  { %548 = vrcp.f32 %v44_v5  ;;  %v93_v4 = vld [vmem:[%s1235_s3 + $0x18] sm:$0xff]  ;;  %v94_v5 = vld [vmem:[%s1235_s3 + $0x20] sm:$0xff]  ;;  %v485_v12 = vld [vmem:[%s1234_s2 + $0x88] sm:$0xff] }
   0xa   :  { %v486_v13 = vld [vmem:[%s1234_s2 + $0x90] sm:$0xff] }
   0xb   :  { %v96_v1 = vld [vmem:[%s1235_s3 + $0x30] sm:$0xff] }
  0x13   :  { %v549_v7 = vpop.eup %548 }
  0x14   :  { %v46_v8 = vmul.f32 %v549_v7, %v43_v6 }
  0x16   :  { %v49_v9 = vadd.f32 1.0, %v46_v8  ;;  %v449_v10 = vadd.f32 -1.0, %v46_v8  ;;  %vm47_vm0 = vcmp.gt.f32.partialorder %v46_v8, 0.41421357 }
  0x18   :  { %550 = vrcp.f32 %v49_v9 }
  0x19   :  { %552 = vrsqrt.f32 %v32_v16 }
  0x22   :  { %v551_v11 = vpop.eup %550 }
  0x23   :  { %v51_v14 = vmul.f32 %v551_v11, %v449_v10  ;;  %v553_v24 = vpop.eup %552 }
  0x24   :  { %v34_v27 = vmul.f32 %v553_v24, %v32_v16 }
  0x25   :  { %v52_v15 = vsel %vm47_vm0, %v51_v14, %v46_v8  ;;  %v487_v14 = vld [vmem:[%s1234_s2 + $0x98] sm:$0xff] }
  0x26   :  { %v53_v17 = vmul.f32 %v52_v15, %v52_v15  ;;  %v36_v31 = vsel %vm35_vm1, %v32_v16, %v34_v27  ;;  %v95_v16 = vld [vmem:[%s1235_s3 + $0x28] sm:$0xff] }
  0x27   :  { %v684_v36 = vsel %vm37_vm2, %v38_v29, %v36_v31  ;;  %v115_v29 = vld [vmem:[%s1236_s4 + $0x8] sm:$0xff] }
  0x28   :  { %v54_v18 = vmul.f32 0.080537446, %v53_v17  ;;  %v82_v48 = vmul.f32 %v74_v34, %v684_v36  ;;  %v83_v49 = vmul.f32 %v75_v35, %v684_v36  ;;  %v84_v50 = vmul.f32 %v76_v37, %v684_v36  ;;  %v97_v34 = vld [vmem:[%s1235_s3 + $0x38] sm:$0xff] }
  0x29   :  { %v85_v51 = vmul.f32 %v77_v38, %v684_v36  ;;  %v86_v58 = vmul.f32 %v78_v39, %v684_v36  ;;  %v738_v59 = vmul.f32 %v79_v41, %v684_v36  ;;  %v741_v60 = vmul.f32 %v80_v42, %v684_v36  ;;  %v116_v39 = vld [vmem:[%s1236_s4 + $0x10] sm:$0xff]  ;;  %v516_v41 = vld [vmem:[%s1234_s2 + $0xc0] sm:$0xff] }
  0x2a   :  { %v450_v19 = vadd.f32 -0.13877685, %v54_v18  ;;  %v753_v2 = vmul.f32 %v81_v43, %v684_v36  ;;  %v765_v6 = vmul.f32 %v452_v45, %v684_v36  ;;  %v768_v7 = vmul.f32 %v453_v46, %v684_v36  ;;  %v461_v45 = vld [vmem:[%s1235_s3 + $0x48] sm:$0xff]  ;;  %v462_v46 = vld [vmem:[%s1235_s3 + $0x50] sm:$0xff] }
  0x2b   :  { %v771_v8 = vmul.f32 %v454_v47, %v684_v36  ;;  %v774_v9 = vmul.f32 %v455_v54, %v684_v36  ;;  %v777_v10 = vmul.f32 %v456_v55, %v684_v36  ;;  %v780_v11 = vmul.f32 %v457_v56, %v684_v36 }
  0x2c   :  { %v56_v20 = vmul.f32 %v450_v19, %v53_v17  ;;  %v802_v18 = vmul.f32 %v459_v62, %v684_v36  ;;  %v488_v19 = vld [vmem:[%s1234_s2 + $0xa0] sm:$0xff]  ;;  %v834_v31 = vmul.f32 %v485_v12, %v684_v36  ;;  %v465_v62 = vld [vmem:[%s1235_s3 + $0x68] sm:$0xff] }
  0x2e   :  { %v57_v21 = vadd.f32 0.19977711, %v56_v20  ;;  %v808_v20 = vmul.f32 %v484_v63, %v684_v36  ;;  %v891_v63 = vmul.f32 %v516_v41, %v684_v36  ;;  %v492_v41 = vld [vmem:[%s1235_s3 + $0x80] sm:$0xff] }
  0x30   :  { %v58_v22 = vmul.f32 %v57_v21, %v53_v17 }
  0x32   :  { %v451_v23 = vadd.f32 -0.3333295, %v58_v22 }
  0x34   :  { %v60_v25 = vmul.f32 %v451_v23, %v53_v17  ;;  %v799_v17 = vmul.f32 %v458_v61, %v684_v36  ;;  %v464_v61 = vld [vmem:[%s1235_s3 + $0x60] sm:$0xff] }
  0x36   :  { %v61_v26 = vmul.f32 %v60_v25, %v52_v15  ;;  %v489_v25 = vld [vmem:[%s1234_s2 + $0xa8] sm:$0xff] }
  0x37   :  { %v865_v47 = vmul.f32 %v489_v25, %v684_v36  ;;  %v469_v25 = vld [vmem:[%s1236_s4 + $0x48] sm:$0xff] }
  0x38   :  { %v62_v28 = vadd.f32 %v61_v26, %v52_v15  ;;  %v490_v26 = vld [vmem:[%s1234_s2 + $0xb0] sm:$0xff] }
  0x3a   :  { %v63_v30 = vadd.f32 0.7853982, %v62_v28 }
  0x3c   :  { %v64_v32 = vsel %vm47_vm0, %v63_v30, %v62_v28  ;;  %v114_v28 = vld [vmem:[%s1236_s4] sm:$0xff]  ;;  %v491_v30 = vld [vmem:[%s1234_s2 + $0xb8] sm:$0xff] }
  0x3d   :  { %v66_v33 = vsub.f32 1.5707964, %v64_v32  ;;  %v877_v54 = vmul.f32 %v491_v30, %v684_v36  ;;  %v470_v30 = vld [vmem:[%s1236_s4 + $0x50] sm:$0xff] }
  0x3f   :  { %v67_v40 = vsel %vm65_vm3, %v66_v33, %v64_v32  ;;  %v837_v32 = vmul.f32 %v486_v13, %v684_v36  ;;  %v840_v33 = vmul.f32 %v487_v14, %v684_v36 }
  0x40   :  { %v69_v44 = vsub.f32 3.1415927, %v67_v40 }
  0x42   :  { %v70_v57 = vsel %vm68_vm4, %v69_v44, %v67_v40  ;;  %v849_v40 = vmul.f32 %v488_v19, %v684_v36  ;;  %v460_v44 = vld [vmem:[%s1235_s3 + $0x40] sm:$0xff]  ;;  %v519_v19 = vld [vmem:[%s1234_s2 + $0xd8] sm:$0xff] }
  0x43   :  { %v72_v0 = vsub.f32 0.0, %v70_v57 }
  0x45   :  { %v793_v15 = vsel %vm71_vm5, %v72_v0, %v70_v57  ;;  %v118_v57 = vld [vmem:[%s1236_s4 + $0x20] sm:$0xff] }
  0x46   :  { %v98_v21 = vmul.f32 %v90_v52, %v793_v15  ;;  %v99_v22 = vmul.f32 %v91_v53, %v793_v15  ;;  %v100_v23 = vmul.f32 %v92_v3, %v793_v15  ;;  %v101_v24 = vmul.f32 %v93_v4, %v793_v15  ;;  %v463_v53 = vld [vmem:[%s1235_s3 + $0x58] sm:$0xff] }
  0x47   :  { %v102_v27 = vmul.f32 %v94_v5, %v793_v15  ;;  %v103_v42 = vmul.f32 %v95_v16, %v793_v15  ;;  %v104_v55 = vmul.f32 %v96_v1, %v793_v15  ;;  %v105_v56 = vmul.f32 %v97_v34, %v793_v15  ;;  %v517_v5 = vld [vmem:[%s1234_s2 + $0xc8] sm:$0xff]  ;;  %v518_v16 = vld [vmem:[%s1234_s2 + $0xd0] sm:$0xff]  ;;  %v520_v1 = vld [vmem:[%s1234_s2 + $0xe0] sm:$0xff] }
  0x48   :  { %v106_v35 = vadd.f32 %v98_v21, %v82_v48  ;;  %v107_v37 = vadd.f32 %v99_v22, %v83_v49  ;;  %v108_v38 = vadd.f32 %v100_v23, %v84_v50  ;;  %v109_v43 = vadd.f32 %v101_v24, %v85_v51  ;;  %v117_v50 = vld [vmem:[%s1236_s4 + $0x18] sm:$0xff]  ;;  %v468_v24 = vld [vmem:[%s1236_s4 + $0x40] sm:$0xff] }
  0x49   :  { %v868_v48 = vmul.f32 %v490_v26, %v684_v36  ;;  %v110_v49 = vadd.f32 %v102_v27, %v86_v58  ;;  %v188_v0 = vmul.f32 %v460_v44, %v793_v15  ;;  %v189_v3 = vmul.f32 %v461_v45, %v793_v15  ;;  %v521_v26 = vld [vmem:[%s1234_s2 + $0xe8] sm:$0xff]  ;;  %v471_v34 = vld [vmem:[%s1236_s4 + $0x58] sm:$0xff] }
  0x4a   :  { %v122_v51 = vadd.f32 %v114_v28, %v106_v35  ;;  %v123_v52 = vadd.f32 %v115_v29, %v107_v37  ;;  %v124_v58 = vadd.f32 %v116_v39, %v108_v38  ;;  %v190_v4 = vmul.f32 %v462_v46, %v793_v15  ;;  %v119_v27 = vld [vmem:[%s1236_s4 + $0x28] sm:$0xff] }
  0x4b   :  { %v111_v12 = vadd.f32 %v103_v42, %v738_v59  ;;  %v125_v13 = vadd.f32 %v117_v50, %v109_v43  ;;  %v191_v14 = vmul.f32 %v463_v53, %v793_v15  ;;  %v126_v21 = vadd.f32 %v118_v57, %v110_v49  ;;  %v493_v42 = vld [vmem:[%s1235_s3 + $0x88] sm:$0xff]  ;;  %v494_v43 = vld [vmem:[%s1235_s3 + $0x90] sm:$0xff]  ;;  %v495_v50 = vld [vmem:[%s1235_s3 + $0x98] sm:$0xff] }
  0x4c   :  { %554 = vtanh.f32 %v122_v51  ;;  %v192_v22 = vmul.f32 %v464_v61, %v793_v15  ;;  %v193_v59 = vmul.f32 %v465_v62, %v793_v15  ;;  %v196_v23 = vadd.f32 %v188_v0, %v765_v6  ;;  %v522_v51 = vld [vmem:[%s1234_s2 + $0xf0] sm:$0xff]  ;;  %v496_v57 = vld [vmem:[%s1235_s3 + $0xa0] sm:$0xff] }
  0x4d   :  { %556 = vtanh.f32 %v123_v52  ;;  %v197_v28 = vadd.f32 %v189_v3, %v768_v7  ;;  %v198_v6 = vadd.f32 %v190_v4, %v771_v8  ;;  %v199_v29 = vadd.f32 %v191_v14, %v774_v9  ;;  %v467_v52 = vld [vmem:[%s1235_s3 + $0x78] sm:$0xff]  ;;  %v473_v3 = vld [vmem:[%s1236_s4 + $0x68] sm:$0xff] }
  0x4e   :  { %558 = vtanh.f32 %v124_v58  ;;  %v935_v35 = vmul.f32 %v517_v5, %v684_v36  ;;  %v938_v37 = vmul.f32 %v518_v16, %v684_v36  ;;  %v941_v7 = vmul.f32 %v519_v19, %v684_v36  ;;  %v472_v58 = vld [vmem:[%s1236_s4 + $0x60] sm:$0xff]  ;;  %v139_v14 = vld [vmem:[%s1237_s5 + $0x8] sm:$0xff] }
  0x4f   :  { %v944_v8 = vmul.f32 %v520_v1, %v684_v36  ;;  %v112_v9 = vadd.f32 %v104_v55, %v741_v60  ;;  %v213_v38 = vadd.f32 %v468_v24, %v196_v23  ;;  %v214_v39 = vadd.f32 %v469_v25, %v197_v28  ;;  %v120_v60 = vld [vmem:[%s1236_s4 + $0x30] sm:$0xff]  ;;  %v497_v1 = vld [vmem:[%s1235_s3 + $0xa8] sm:$0xff] }
  0x50   :  { %v957_v44 = vmul.f32 %v521_v26, %v684_v36  ;;  %v113_v45 = vadd.f32 %v105_v56, %v753_v2  ;;  %v127_v46 = vadd.f32 %v119_v27, %v111_v12  ;;  %560 = vtanh.f32 %v125_v13  ;;  %v466_v2 = vld [vmem:[%s1235_s3 + $0x70] sm:$0xff]  ;;  %v138_v13 = vld [vmem:[%s1237_s5] sm:$0xff] }
  0x51   :  { %v215_v49 = vadd.f32 %v470_v30, %v198_v6  ;;  %562 = vtanh.f32 %v126_v21  ;;  %v200_v53 = vadd.f32 %v192_v22, %v777_v10  ;;  %v201_v55 = vadd.f32 %v193_v59, %v780_v11  ;;  %v121_v10 = vld [vmem:[%s1236_s4 + $0x38] sm:$0xff]  ;;  %v498_v27 = vld [vmem:[%s1235_s3 + $0xb0] sm:$0xff]  ;;  %v500_v6 = vld [vmem:[%s1236_s4 + $0x80] sm:$0xff] }
  0x52   :  { %v216_v56 = vadd.f32 %v471_v34, %v199_v29  ;;  %564 = vtanh.f32 %v213_v38  ;;  %v280_v61 = vmul.f32 %v492_v41, %v793_v15  ;;  %v281_v62 = vmul.f32 %v493_v42, %v793_v15  ;;  %v501_v29 = vld [vmem:[%s1236_s4 + $0x88] sm:$0xff] }
  0x53   :  { %v282_v0 = vmul.f32 %v494_v43, %v793_v15  ;;  %v128_v11 = vadd.f32 %v120_v60, %v112_v9  ;;  %566 = vtanh.f32 %v214_v39  ;;  %v283_v4 = vmul.f32 %v495_v50, %v793_v15  ;;  %v499_v9 = vld [vmem:[%s1235_s3 + $0xb8] sm:$0xff]  ;;  %v502_v39 = vld [vmem:[%s1236_s4 + $0x90] sm:$0xff] }
  0x54   :  { %v994_v5 = vmul.f32 %v522_v51, %v684_v36  ;;  %v194_v16 = vmul.f32 %v466_v2, %v793_v15  ;;  %v195_v19 = vmul.f32 %v467_v52, %v793_v15  ;;  %568 = vtanh.f32 %v215_v49  ;;  %v474_v60 = vld [vmem:[%s1236_s4 + $0x70] sm:$0xff]  ;;  %v475_v51 = vld [vmem:[%s1236_s4 + $0x78] sm:$0xff]  ;;  %v476_v2 = vld [vmem:[%s1237_s5 + $0x40] sm:$0xff] }
  0x55   :  { %v284_v21 = vmul.f32 %v496_v57, %v793_v15  ;;  %570 = vtanh.f32 %v127_v46  ;;  %v217_v59 = vadd.f32 %v472_v58, %v200_v53  ;;  %v288_v23 = vadd.f32 %v280_v61, %v808_v20  ;;  %v504_v46 = vld [vmem:[%s1236_s4 + $0xa0] sm:$0xff]  ;;  %v477_v58 = vld [vmem:[%s1237_s5 + $0x48] sm:$0xff] }
  0x56   :  { %v555_v12 = vpop.eup %554  ;;  %v289_v24 = vadd.f32 %v281_v62, %v834_v31  ;;  %v129_v25 = vadd.f32 %v121_v10, %v113_v45  ;;  %v218_v26 = vadd.f32 %v473_v3, %v201_v55  ;;  %572 = vtanh.f32 %v216_v56  ;;  %v140_v31 = vld [vmem:[%s1237_s5 + $0x10] sm:$0xff]  ;;  %v503_v45 = vld [vmem:[%s1236_s4 + $0x98] sm:$0xff] }
  0x57   :  { %v557_v22 = vpop.eup %556  ;;  %v290_v28 = vadd.f32 %v282_v0, %v837_v32  ;;  %v146_v30 = vmul.f32 %v555_v12, %v138_v13  ;;  %v285_v32 = vmul.f32 %v497_v1, %v793_v15  ;;  %v291_v38 = vadd.f32 %v283_v4, %v840_v33  ;;  %v141_v56 = vld [vmem:[%s1237_s5 + $0x18] sm:$0xff]  ;;  %v524_v12 = vld [vmem:[%s1235_s3 + $0xc0] sm:$0xff]  ;;  %v525_v1 = vld [vmem:[%s1235_s3 + $0xc8] sm:$0xff] }
  0x58   :  { %v559_v20 = vpop.eup %558  ;;  %v147_v34 = vmul.f32 %v557_v22, %v139_v14  ;;  %574 = vtanh.f32 %v128_v11  ;;  %v202_v41 = vadd.f32 %v194_v16, %v799_v17  ;;  %v203_v42 = vadd.f32 %v195_v19, %v802_v18  ;;  %v523_v18 = vld [vmem:[%s1234_s2 + $0xf8] sm:$0xff]  ;;  %v505_v11 = vld [vmem:[%s1236_s4 + $0xa8] sm:$0xff] }
  0x59   :  { %v292_v43 = vadd.f32 %v284_v21, %v849_v40  ;;  %576 = vtanh.f32 %v217_v59  ;;  %v286_v33 = vmul.f32 %v498_v27, %v793_v15  ;;  %v305_v17 = vadd.f32 %v500_v6, %v288_v23  ;;  %v526_v23 = vld [vmem:[%s1235_s3 + $0xd0] sm:$0xff]  ;;  %v529_v6 = vld [vmem:[%s1235_s3 + $0xe8] sm:$0xff] }
  0x5a   :  { %v306_v49 = vadd.f32 %v501_v29, %v289_v24  ;;  %v561_v40 = vpop.eup %560  ;;  %578 = vtanh.f32 %v129_v25  ;;  %v148_v50 = vmul.f32 %v559_v20, %v140_v31  ;;  %v287_v52 = vmul.f32 %v499_v9, %v793_v15  ;;  %v527_v24 = vld [vmem:[%s1235_s3 + $0xd8] sm:$0xff]  ;;  %v506_v27 = vld [vmem:[%s1236_s4 + $0xb0] sm:$0xff] }
  0x5b   :  { %v307_v53 = vadd.f32 %v502_v39, %v290_v28  ;;  %v563_v55 = vpop.eup %562  ;;  %v154_v57 = vadd.f32 %v147_v34, %v146_v30  ;;  %580 = vtanh.f32 %v218_v26  ;;  %v293_v61 = vadd.f32 %v285_v32, %v865_v47  ;;  %v478_v47 = vld [vmem:[%s1237_s5 + $0x50] sm:$0xff]  ;;  %v142_v26 = vld [vmem:[%s1237_s5 + $0x20] sm:$0xff]  ;;  %v479_v31 = vld [vmem:[%s1237_s5 + $0x58] sm:$0xff] }
  0x5c   :  { %v308_v62 = vadd.f32 %v503_v45, %v291_v38  ;;  %v565_v0 = vpop.eup %564  ;;  %v219_v10 = vadd.f32 %v474_v60, %v202_v41  ;;  %v309_v3 = vadd.f32 %v504_v46, %v292_v43  ;;  %582 = vtanh.f32 %v305_v17  ;;  %v507_v9 = vld [vmem:[%s1236_s4 + $0xb8] sm:$0xff]  ;;  %v530_v38 = vld [vmem:[%s1235_s3 + $0xf0] sm:$0xff] }
  0x5d   :  { %v1065_v4 = vmul.f32 %v523_v18, %v684_v36  ;;  %v567_v13 = vpop.eup %566  ;;  %v220_v14 = vadd.f32 %v475_v51, %v203_v42  ;;  %v238_v16 = vmul.f32 %v565_v0, %v476_v2  ;;  %v294_v19 = vadd.f32 %v286_v33, %v868_v48  ;;  %v528_v48 = vld [vmem:[%s1235_s3 + $0xe0] sm:$0xff]  ;;  %v531_v33 = vld [vmem:[%s1235_s3 + $0xf8] sm:$0xff] }
  0x5e   :  { %584 = vtanh.f32 %v306_v49  ;;  %v569_v36 = vpop.eup %568  ;;  %v149_v21 = vmul.f32 %v561_v40, %v141_v56  ;;  %v239_v22 = vmul.f32 %v567_v13, %v477_v58  ;;  %v295_v59 = vadd.f32 %v287_v52, %v877_v54  ;;  %v480_v18 = vld [vmem:[%s1237_s5 + $0x60] sm:$0xff]  ;;  %v534_v58 = vld [vmem:[%s1236_s4 + $0xd0] sm:$0xff] }
  0x5f   :  { %586 = vtanh.f32 %v307_v53  ;;  %v1087_v25 = vpop.eup %570  ;;  %v155_v54 = vadd.f32 %v154_v57, %v148_v50  ;;  %v310_v28 = vadd.f32 %v505_v11, %v293_v61  ;;  %v372_v29 = vmul.f32 %v524_v12, %v793_v15  ;;  %v532_v2 = vld [vmem:[%s1236_s4 + $0xc0] sm:$0xff] }
  0x60   :  { %588 = vtanh.f32 %v308_v62  ;;  %v573_v20 = vpop.eup %572  ;;  %v240_v30 = vmul.f32 %v569_v36, %v478_v47  ;;  %v246_v34 = vadd.f32 %v239_v22, %v238_v16  ;;  %v373_v32 = vmul.f32 %v525_v1, %v793_v15  ;;  %v509_v62 = vld [vmem:[%s1237_s5 + $0x88] sm:$0xff] }
  0x61   :  { %590 = vtanh.f32 %v309_v3  ;;  %v374_v39 = vmul.f32 %v526_v23, %v793_v15  ;;  %v375_v41 = vmul.f32 %v527_v24, %v793_v15  ;;  %v376_v42 = vmul.f32 %v528_v48, %v793_v15  ;;  %v535_v3 = vld [vmem:[%s1236_s4 + $0xd8] sm:$0xff]  ;;  %v481_v22 = vld [vmem:[%s1237_s5 + $0x68] sm:$0xff] }
  0x62   :  { %592 = vtanh.f32 %v219_v10  ;;  %v1112_v43 = vpop.eup %574  ;;  %v150_v45 = vmul.f32 %v563_v55, %v142_v26  ;;  %v311_v60 = vadd.f32 %v506_v27, %v294_v19  ;;  %v377_v46 = vmul.f32 %v529_v6, %v793_v15  ;;  %v508_v55 = vld [vmem:[%s1237_s5 + $0x80] sm:$0xff]  ;;  %v537_v19 = vld [vmem:[%s1236_s4 + $0xe8] sm:$0xff] }
  0x63   :  { %594 = vtanh.f32 %v220_v14  ;;  %v577_v17 = vpop.eup %576  ;;  %v156_v49 = vadd.f32 %v155_v54, %v149_v21  ;;  %v241_v40 = vmul.f32 %v573_v20, %v479_v31  ;;  %v312_v50 = vadd.f32 %v507_v9, %v295_v59  ;;  %v510_v14 = vld [vmem:[%s1237_s5 + $0x90] sm:$0xff]  ;;  %v512_v20 = vld [vmem:[%s1237_s5 + $0xa0] sm:$0xff] }
  0x64   :  { %v380_v51 = vadd.f32 %v372_v29, %v891_v63  ;;  %v1125_v52 = vpop.eup %578  ;;  %v247_v53 = vadd.f32 %v246_v34, %v240_v30  ;;  %596 = vtanh.f32 %v310_v28  ;;  %v378_v56 = vmul.f32 %v530_v38, %v793_v15  ;;  %v533_v63 = vld [vmem:[%s1236_s4 + $0xc8] sm:$0xff]  ;;  %v538_v28 = vld [vmem:[%s1236_s4 + $0xf0] sm:$0xff]  ;;  %v539_v38 = vld [vmem:[%s1236_s4 + $0xf8] sm:$0xff] }
  0x65   :  { %v381_v57 = vadd.f32 %v373_v32, %v935_v35  ;;  %v581_v61 = vpop.eup %580  ;;  %v379_v0 = vmul.f32 %v531_v33, %v793_v15  ;;  %v382_v10 = vadd.f32 %v374_v39, %v938_v37  ;;  %v383_v11 = vadd.f32 %v375_v41, %v941_v7  ;;  %v536_v15 = vld [vmem:[%s1236_s4 + $0xe0] sm:$0xff]  ;;  %v144_v41 = vld [vmem:[%s1237_s5 + $0x30] sm:$0xff] }
  0x66   :  { %v384_v35 = vadd.f32 %v376_v42, %v944_v8  ;;  %v583_v12 = vpop.eup %582  ;;  %v242_v13 = vmul.f32 %v577_v17, %v480_v18  ;;  %598 = vtanh.f32 %v311_v60  ;;  %v385_v47 = vadd.f32 %v377_v46, %v957_v44  ;;  %v511_v8 = vld [vmem:[%s1237_s5 + $0x98] sm:$0xff]  ;;  %v143_v44 = vld [vmem:[%s1237_s5 + $0x28] sm:$0xff] }
  0x67   :  { %v397_v37 = vadd.f32 %v532_v2, %v380_v51  ;;  %600 = vtanh.f32 %v312_v50  ;;  %v330_v16 = vmul.f32 %v583_v12, %v508_v55  ;;  %v398_v1 = vadd.f32 %v533_v63, %v381_v57  ;;  %v513_v17 = vld [vmem:[%s1237_s5 + $0xa8] sm:$0xff]  ;;  %v145_v51 = vld [vmem:[%s1237_s5 + $0x38] sm:$0xff] }
  0x68   :  { %v585_v7 = vpop.eup %584  ;;  %v399_v36 = vadd.f32 %v534_v58, %v382_v10  ;;  %v248_v59 = vadd.f32 %v247_v53, %v241_v40  ;;  %v386_v24 = vadd.f32 %v378_v56, %v994_v5  ;;  %v400_v48 = vadd.f32 %v535_v3, %v383_v11  ;;  %v483_v57 = vld [vmem:[%s1237_s5 + $0x78] sm:$0xff]  ;;  %v542_v11 = vld [vmem:[%s1237_s5 + $0xd0] sm:$0xff] }
  0x69   :  { %v587_v21 = vpop.eup %586  ;;  %v331_v23 = vmul.f32 %v585_v7, %v509_v62  ;;  %v387_v27 = vadd.f32 %v379_v0, %v1065_v4  ;;  %v401_v6 = vadd.f32 %v536_v15, %v384_v35  ;;  %602 = vtanh.f32 %v397_v37  ;;  %v541_v62 = vld [vmem:[%s1237_s5 + $0xc8] sm:$0xff] }
  0x6a   :  { %v589_v26 = vpop.eup %588  ;;  %v332_v54 = vmul.f32 %v587_v21, %v510_v14  ;;  %v402_v34 = vadd.f32 %v537_v19, %v385_v47  ;;  %604 = vtanh.f32 %v398_v1  ;;  %v151_v9 = vmul.f32 %v1087_v25, %v143_v44  ;;  %v482_v25 = vld [vmem:[%s1237_s5 + $0x70] sm:$0xff]  ;;  %v543_v14 = vld [vmem:[%s1237_s5 + $0xd8] sm:$0xff]  ;;  %v544_v19 = vld [vmem:[%s1237_s5 + $0xe0] sm:$0xff] }
  0x6b   :  { %v591_v29 = vpop.eup %590  ;;  %v333_v31 = vmul.f32 %v589_v26, %v511_v8  ;;  %v338_v30 = vadd.f32 %v331_v23, %v330_v16  ;;  %v157_v32 = vadd.f32 %v156_v49, %v150_v45  ;;  %v243_v4 = vmul.f32 %v581_v61, %v481_v22  ;;  %v514_v61 = vld [vmem:[%s1237_s5 + $0xb0] sm:$0xff] }
  0x6c   :  { %v593_v5 = vpop.eup %592  ;;  %606 = vtanh.f32 %v399_v36  ;;  %v249_v42 = vadd.f32 %v248_v59, %v242_v13  ;;  %v403_v33 = vadd.f32 %v538_v28, %v386_v24  ;;  %v334_v45 = vmul.f32 %v591_v29, %v512_v20  ;;  %v545_v24 = vld [vmem:[%s1237_s5 + $0xe8] sm:$0xff] }
  0x6d   :  { %v595_v39 = vpop.eup %594  ;;  %v339_v60 = vadd.f32 %v338_v30, %v332_v54  ;;  %608 = vtanh.f32 %v400_v48  ;;  %v404_v18 = vadd.f32 %v539_v38, %v387_v27  ;;  %v152_v40 = vmul.f32 %v1112_v43, %v144_v41  ;;  %v540_v43 = vld [vmem:[%s1237_s5 + $0xc0] sm:$0xff]  ;;  %v547_v30 = vld [vmem:[%s1237_s5 + $0xf8] sm:$0xff] }
  0x6e   :  { %610 = vtanh.f32 %v401_v6  ;;  %v597_v46 = vpop.eup %596  ;;  %v158_v2 = vadd.f32 %v157_v32, %v151_v9  ;;  %v244_v53 = vmul.f32 %v593_v5, %v482_v25  ;;  %v250_v55 = vadd.f32 %v249_v42, %v243_v4  ;;  %v546_v6 = vld [vmem:[%s1237_s5 + $0xf0] sm:$0xff] }
  0x6f   :  { %v340_v49 = vadd.f32 %v339_v60, %v333_v31  ;;  %612 = vtanh.f32 %v402_v34  ;;  %v335_v63 = vmul.f32 %v597_v46, %v513_v17  ;;  %v153_v10 = vmul.f32 %v1125_v52, %v145_v51  ;;  %v515_v52 = vld [vmem:[%s1237_s5 + $0xb8] sm:$0xff] }
  0x70   :  { %v599_v50 = vpop.eup %598  ;;  %614 = vtanh.f32 %v403_v33  ;;  %v159_v3 = vadd.f32 %v158_v2, %v152_v40  ;;  %v245_v12 = vmul.f32 %v595_v39, %v483_v57  ;;  %v251_v13 = vadd.f32 %v250_v55, %v244_v53 }
  0x71   :  { %v601_v56 = vpop.eup %600  ;;  %v341_v58 = vadd.f32 %v340_v49, %v334_v45  ;;  %616 = vtanh.f32 %v404_v18  ;;  %v336_v37 = vmul.f32 %v599_v50, %v514_v61  ;;  %v438_v60 = vstv %s1238_s6 }
  0x72   :  { %v160_v59 = vadd.f32 %v159_v3, %v153_v10  ;;  %v252_v23 = vadd.f32 %v251_v13, %v245_v12  ;;  %v337_v48 = vmul.f32 %v601_v56, %v515_v52 }
  0x73   :  { %v603_v0 = vpop.eup %602  ;;  %v342_v7 = vadd.f32 %v341_v58, %v335_v63 }
  0x74   :  { %v605_v35 = vpop.eup %604  ;;  %v422_v47 = vmul.f32 %v603_v0, %v540_v43  ;;  %v253_v34 = vadd.f32 %v252_v23, %v160_v59 }
  0x75   :  { %v423_v8 = vmul.f32 %v605_v35, %v541_v62  ;;  %v343_v26 = vadd.f32 %v342_v7, %v336_v37 }
  0x76   :  { %v607_v15 = vpop.eup %606 }
  0x77   :  { %v609_v16 = vpop.eup %608  ;;  %v424_v1 = vmul.f32 %v607_v15, %v542_v11  ;;  %v430_v44 = vadd.f32 %v423_v8, %v422_v47  ;;  %v344_v5 = vadd.f32 %v343_v26, %v337_v48 }
  0x78   :  { %v611_v36 = vpop.eup %610  ;;  %v425_v21 = vmul.f32 %v609_v16, %v543_v14 }
  0x79   :  { %v613_v22 = vpop.eup %612  ;;  %v426_v54 = vmul.f32 %v611_v36, %v544_v19  ;;  %v431_v27 = vadd.f32 %v430_v44, %v424_v1  ;;  %v345_v39 = vadd.f32 %v344_v5, %v253_v34 }
  0x7a   :  { %v615_v28 = vpop.eup %614  ;;  %v427_v29 = vmul.f32 %v613_v22, %v545_v24 }
  0x7b   :  { %v432_v20 = vadd.f32 %v431_v27, %v425_v21  ;;  %v617_v31 = vpop.eup %616  ;;  %v428_v9 = vmul.f32 %v615_v28, %v546_v6 }
  0x7c   :  { %v429_v4 = vmul.f32 %v617_v31, %v547_v30 }
  0x7d   :  { %v433_v32 = vadd.f32 %v432_v20, %v426_v54 }
  0x7f   :  { %v434_v38 = vadd.f32 %v433_v32, %v427_v29 }
  0x81   :  { %v435_v41 = vadd.f32 %v434_v38, %v428_v9 }
  0x83   :  { %v436_v42 = vadd.f32 %v435_v41, %v429_v4 }
  0x85   :  { %v437_v33 = vadd.f32 %v436_v42, %v345_v39 }
  0x87   :  { %v439_v25 = vadd.f32 %v438_v60, %v437_v33 }
  0x89   :  { %v440_v45 = vmul.f32 0.5, %v439_v25 }
  0x8b   :  { %618 = vtanh.f32 %v440_v45 }
  0x95   :  { %v619_v46 = vpop.eup %618 }
  0x96   :  { %v442_v17 = vadd.f32 1.0, %v619_v46 }
  0x98   :  { %v443_v49 = vmul.f32 0.5, %v442_v17 }
  0x9a   :  { %444 = vst [vmem:[%s1239_s7] sm:$0xff] %v443_v49 }

</bundles_post_ra>
